<compile_context>
chip_gen: v5e
topology: v5e:2x2
jax: 0.10.0
libtpu: 0.0.40
codegen_flags: <defaults>
</compile_context>

<pallas_src>
import jax
import jax.numpy as jnp
import numpy as np
from jax.experimental import pallas as pl
from jax.experimental.pallas import tpu as pltpu


def affine_coupling_kernel(x_ref, maskpack_ref, w1p_ref, w2t_ref, pvec_ref,
                           out_ref, ldj_ref):
    # x_ref:        (N, C, HW)  f32  all batch elements (single grid step)
    # maskpack_ref: (2, N*HW)   f32  row 0 = mask, row 1 = 1 - mask (tiled over N)
    # w1p_ref:      (HID, C+1)  f32  [:, :C] = W1^T, [:, C] = b1
    # w2t_ref:      (2C, HID)   f32  fused second 1x1 conv (scale rows, then shift rows)
    # pvec_ref:     (2C, 2)     f32  [:,0] = b2 ; [0:C,1] = exp(-s_fac), [C:2C,1] = exp(+s_fac)
    # out_ref:      (N, C, HW)  f32
    # ldj_ref:      (N,)        f32  SMEM
    N, C, HW = x_ref.shape
    NHW = N * HW
    HID = w1p_ref.shape[0]

    x = x_ref[...]                                            # (N, C, HW)
    # Fold batch onto the lane axis: (C, N*HW), lane-dense (N*HW multiple of 128).
    xf = jnp.concatenate([x[n] for n in range(N)], axis=-1)   # (C, NHW) f32

    mask = maskpack_ref[0:1, :]                               # (1, NHW)
    inv_mask = maskpack_ref[1:2, :]                           # (1, NHW)

    # x1 = mask * x   (mask is per-spatial-position, broadcasts over channels)
    x1 = xf * mask                                            # (C, NHW) f32

    # First 1x1 conv (K = C = 4) on the VPU: C broadcast-FMAs (outer products),
    # f32 throughout.  MXU would use only 4/256 of its contraction depth here.
    w1 = w1p_ref[...]                                         # (HID, C+1)
    h = w1[:, 0:1] * x1[0:1, :]                               # (HID, NHW)
    for c in range(1, C):
        h = h + w1[:, c:c + 1] * x1[c:c + 1, :]
    h = jnp.maximum(h + w1[:, C:C + 1], 0.0)                  # + b1, ReLU

    # Second 1x1 conv (K = HID = 32): one fused MXU matmul for scale & shift.
    y = jnp.dot(w2t_ref[...], h, preferred_element_type=jnp.float32)  # (2C, NHW)
    y = y + pvec_ref[:, 0:1]                                  # + b2

    scale = y[0:C, :]                                         # (C, NHW)
    shift = y[C:2 * C, :]                                     # (C, NHW)

    isfac = pvec_ref[0:C, 1:2]                                # exp(-scaling_fac) (C, 1)
    sfac = pvec_ref[C:2 * C, 1:2]                             # exp(+scaling_fac) (C, 1)

    # scale = tanh(scale / s_fac) * s_fac  (precomputed reciprocals, no divide)
    scale = jnp.tanh(scale * isfac) * sfac
    scale = inv_mask * scale
    shift = inv_mask * shift

    outf = (xf + shift) * jnp.exp(scale)                      # (C, NHW)

    # Un-fold the batch with static 128-aligned lane slices; per-batch ldj.
    for n in range(N):
        out_ref[n] = outf[:, n * HW:(n + 1) * HW]
        ldj_ref[n] = jnp.sum(scale[:, n * HW:(n + 1) * HW])


def affine_coupling_forward(x_nchw, mask_hw, w1, b1, w2, b2, scaling_fac):
    """x_nchw: (N, C, H, W) float32.  Returns (out_nchw, log_det_j (N,))."""
    N, C, H, W = x_nchw.shape
    HW = H * W
    NHW = N * HW
    HID = w1.shape[1]

    # NCHW -> (N, C, HW): pure reshape, no HBM transpose.
    x_flat = x_nchw.reshape(N, C, HW)

    # mask / (1 - mask) packed into one (2, N*HW) ref (tiled over the batch).
    mask_row = mask_hw.reshape(1, HW).astype(jnp.float32)
    mask_tiled = jnp.tile(mask_row, (1, N))                   # (1, N*HW)
    maskpack = jnp.concatenate([mask_tiled, 1.0 - mask_tiled], axis=0)  # (2, N*HW)

    # First-layer weight slab: W1^T with b1 appended as the last column.
    w1p = jnp.concatenate(
        [jnp.transpose(w1), b1.reshape(HID, 1)], axis=1).astype(jnp.float32)  # (HID, C+1)

    # Fused second-layer weight (scale rows first, then shift rows -- matches chunk(2,1)).
    w2t = jnp.transpose(w2).astype(jnp.float32)               # (2C, HID)

    # Small per-channel params packed into one (2C, 2) ref.
    sfac = jnp.exp(scaling_fac)                               # (C,)
    isfac = jnp.exp(-scaling_fac)                             # (C,)
    pvec = jnp.stack(
        [b2, jnp.concatenate([isfac, sfac])], axis=1).astype(jnp.float32)  # (2C, 2)

    grid_spec = pltpu.PrefetchScalarGridSpec(
        num_scalar_prefetch=0,
        grid=(1,),
        in_specs=[
            pl.BlockSpec((N, C, HW), lambda i: (0, 0, 0)),    # x
            pl.BlockSpec((2, NHW), lambda i: (0, 0)),         # mask / ~mask
            pl.BlockSpec((HID, C + 1), lambda i: (0, 0)),     # W1^T | b1
            pl.BlockSpec((2 * C, HID), lambda i: (0, 0)),     # fused W2^T
            pl.BlockSpec((2 * C, 2), lambda i: (0, 0)),       # b2 | exp(+/- s_fac)
        ],
        out_specs=[
            pl.BlockSpec((N, C, HW), lambda i: (0, 0, 0)),
            pl.BlockSpec((N,), lambda i: (0,), memory_space=pltpu.SMEM),
        ],
    )

    out_flat, log_det_j = pl.pallas_call(
        affine_coupling_kernel,
        out_shape=(
            jax.ShapeDtypeStruct((N, C, HW), jnp.float32),
            jax.ShapeDtypeStruct((N,), jnp.float32),
        ),
        grid_spec=grid_spec,
        compiler_params=pltpu.CompilerParams(
            dimension_semantics=("arbitrary",)),
    )(x_flat, maskpack, w1p, w2t, pvec)

    # (N, C, HW) -> NCHW: pure reshape, no transpose.
    out_nchw = out_flat.reshape(N, C, H, W)
    return out_nchw, log_det_j


def reference_forward(x_nchw, mask_hw, w1, b1, w2, b2, scaling_fac):
    """Pure-JAX f32 mirror of the PyTorch forward (NCHW), for verification."""
    mask = mask_hw[None, None].astype(jnp.float32)            # (1,1,H,W)
    x1 = mask * x_nchw
    h = jnp.einsum("nchw,co->nohw", x1, w1) + b1[None, :, None, None]
    h = jnp.maximum(h, 0.0)
    y = jnp.einsum("nchw,co->nohw", h, w2) + b2[None, :, None, None]
    scale, shift = jnp.split(y, 2, axis=1)
    s_fac = jnp.exp(scaling_fac).reshape(1, -1, 1, 1)
    scale = jnp.tanh(scale / s_fac) * s_fac
    scale = (1.0 - mask) * scale
    shift = (1.0 - mask) * shift
    out = (x_nchw + shift) * jnp.exp(scale)
    ldj = jnp.sum(scale, axis=(1, 2, 3))
    return out, ldj


if __name__ == "__main__":
    # Small shapes consistent with the module: chw=(4, 16, 16), batch=2, hidden=32
    N, C, H, W = 2, 4, 16, 16
    HID = 32

    key = jax.random.PRNGKey(0)
    k_x, k_w1, k_b1, k_w2, k_b2 = jax.random.split(key, 5)

    x = jax.random.normal(k_x, (N, C, H, W), dtype=jnp.float32)

    # Deterministic parameters for the synthetic sub-net m (1x1 conv MLP: C->HID->2C)
    w1 = jax.random.normal(k_w1, (C, HID), dtype=jnp.float32) * 0.1
    b1 = jax.random.normal(k_b1, (HID,), dtype=jnp.float32) * 0.01
    w2 = jax.random.normal(k_w2, (HID, 2 * C), dtype=jnp.float32) * 0.1
    b2 = jax.random.normal(k_b2, (2 * C,), dtype=jnp.float32) * 0.01

    # Module params: scaling_fac initialized to ones (as in __init__)
    scaling_fac = jnp.ones((C,), dtype=jnp.float32)

    # Checkerboard mask, modify_x2=True  =>  mask = ~((j+k) % 2 == 0)
    jj, kk = np.meshgrid(np.arange(H), np.arange(W), indexing="ij")
    mask_np = ((jj + kk) % 2 == 1)
    mask_hw = jnp.asarray(mask_np, dtype=jnp.float32)

    out, ldj = affine_coupling_forward(x, mask_hw, w1, b1, w2, b2, scaling_fac)
    out = jax.block_until_ready(out)
    ldj = jax.block_until_ready(ldj)

    out_ref, ldj_ref = reference_forward(x, mask_hw, w1, b1, w2, b2, scaling_fac)
    # f32 throughout (VPU first layer, f32-accumulated MXU second layer);
    # tolerances cover MXU default-precision rounding.
    np.testing.assert_allclose(np.asarray(out), np.asarray(out_ref), atol=2e-2, rtol=2e-2)
    np.testing.assert_allclose(np.asarray(ldj), np.asarray(ldj_ref), atol=1e-1, rtol=2e-2)

    print("KERNEL_OK")
</pallas_src>

<mosaic_0001>
module attributes {stable_mosaic.version = 11 : i64} {
  func.func @affine_coupling_kernel(%arg0: i32, %arg1: memref<2x4x256xf32, #tpu.memory_space<vmem>>, %arg2: memref<2x512xf32, #tpu.memory_space<vmem>>, %arg3: memref<32x5xf32, #tpu.memory_space<vmem>>, %arg4: memref<8x32xf32, #tpu.memory_space<vmem>>, %arg5: memref<8x2xf32, #tpu.memory_space<vmem>>, %arg6: memref<2x4x256xf32, #tpu.memory_space<vmem>>, %arg7: memref<2xf32, #tpu.memory_space<smem>>) attributes {dimension_semantics = [#tpu.dimension_semantics<arbitrary>], iteration_bounds = array<i64: 1>, scalar_prefetch = 0 : i64, scratch_operands = 0 : i64, tpu.core_type = #tpu.core_type<tc>, window_params = [{pipeline_mode = #tpu.pipeline_mode<synchronous>, transform_indices = @transform_0, window_bounds = array<i64: 2, 4, 256>}, {pipeline_mode = #tpu.pipeline_mode<synchronous>, transform_indices = @transform_1, window_bounds = array<i64: 2, 512>}, {pipeline_mode = #tpu.pipeline_mode<synchronous>, transform_indices = @transform_2, window_bounds = array<i64: 32, 5>}, {pipeline_mode = #tpu.pipeline_mode<synchronous>, transform_indices = @transform_3, window_bounds = array<i64: 8, 32>}, {pipeline_mode = #tpu.pipeline_mode<synchronous>, transform_indices = @transform_4, window_bounds = array<i64: 8, 2>}, {pipeline_mode = #tpu.pipeline_mode<synchronous>, transform_indices = @transform_5, window_bounds = array<i64: 2, 4, 256>}, {transform_indices = @transform_6, window_bounds = array<i64: 2>}]} {
    %c0 = arith.constant 0 : index
    %c0_0 = arith.constant 0 : index
    %c0_1 = arith.constant 0 : index
    %0 = vector.load %arg1[%c0, %c0_0, %c0_1] : memref<2x4x256xf32, #tpu.memory_space<vmem>>, vector<2x4x256xf32>
    %1 = vector.extract_strided_slice %0 {offsets = [0, 0, 0], sizes = [1, 4, 256], strides = [1, 1, 1]} : vector<2x4x256xf32> to vector<1x4x256xf32>
    %2 = vector.shape_cast %1 : vector<1x4x256xf32> to vector<4x256xf32>
    %3 = vector.extract_strided_slice %0 {offsets = [1, 0, 0], sizes = [1, 4, 256], strides = [1, 1, 1]} : vector<2x4x256xf32> to vector<1x4x256xf32>
    %4 = vector.shape_cast %3 : vector<1x4x256xf32> to vector<4x256xf32>
    %5 = tpu.concatenate %2, %4 in 1 : vector<4x256xf32>, vector<4x256xf32> -> vector<4x512xf32>
    %c0_2 = arith.constant 0 : index
    %c0_3 = arith.constant 0 : index
    %6 = vector.load %arg2[%c0_2, %c0_3] : memref<2x512xf32, #tpu.memory_space<vmem>>, vector<1x512xf32>
    %c1 = arith.constant 1 : index
    %c0_4 = arith.constant 0 : index
    %7 = vector.load %arg2[%c1, %c0_4] : memref<2x512xf32, #tpu.memory_space<vmem>>, vector<1x512xf32>
    %8 = vector.broadcast %6 : vector<1x512xf32> to vector<4x512xf32>
    %9 = arith.mulf %5, %8 : vector<4x512xf32>
    %c0_5 = arith.constant 0 : index
    %c0_6 = arith.constant 0 : index
    %10 = vector.load %arg3[%c0_5, %c0_6] : memref<32x5xf32, #tpu.memory_space<vmem>>, vector<32x5xf32>
    %11 = vector.extract_strided_slice %10 {offsets = [0, 0], sizes = [32, 1], strides = [1, 1]} : vector<32x5xf32> to vector<32x1xf32>
    %12 = vector.extract_strided_slice %9 {offsets = [0, 0], sizes = [1, 512], strides = [1, 1]} : vector<4x512xf32> to vector<1x512xf32>
    %13 = vector.broadcast %11 : vector<32x1xf32> to vector<32x512xf32>
    %14 = vector.broadcast %12 : vector<1x512xf32> to vector<32x512xf32>
    %15 = arith.mulf %13, %14 : vector<32x512xf32>
    %16 = vector.extract_strided_slice %10 {offsets = [0, 1], sizes = [32, 1], strides = [1, 1]} : vector<32x5xf32> to vector<32x1xf32>
    %17 = vector.extract_strided_slice %9 {offsets = [1, 0], sizes = [1, 512], strides = [1, 1]} : vector<4x512xf32> to vector<1x512xf32>
    %18 = vector.broadcast %16 : vector<32x1xf32> to vector<32x512xf32>
    %19 = vector.broadcast %17 : vector<1x512xf32> to vector<32x512xf32>
    %20 = arith.mulf %18, %19 : vector<32x512xf32>
    %21 = arith.addf %15, %20 : vector<32x512xf32>
    %22 = vector.extract_strided_slice %10 {offsets = [0, 2], sizes = [32, 1], strides = [1, 1]} : vector<32x5xf32> to vector<32x1xf32>
    %23 = vector.extract_strided_slice %9 {offsets = [2, 0], sizes = [1, 512], strides = [1, 1]} : vector<4x512xf32> to vector<1x512xf32>
    %24 = vector.broadcast %22 : vector<32x1xf32> to vector<32x512xf32>
    %25 = vector.broadcast %23 : vector<1x512xf32> to vector<32x512xf32>
    %26 = arith.mulf %24, %25 : vector<32x512xf32>
    %27 = arith.addf %21, %26 : vector<32x512xf32>
    %28 = vector.extract_strided_slice %10 {offsets = [0, 3], sizes = [32, 1], strides = [1, 1]} : vector<32x5xf32> to vector<32x1xf32>
    %29 = vector.extract_strided_slice %9 {offsets = [3, 0], sizes = [1, 512], strides = [1, 1]} : vector<4x512xf32> to vector<1x512xf32>
    %30 = vector.broadcast %28 : vector<32x1xf32> to vector<32x512xf32>
    %31 = vector.broadcast %29 : vector<1x512xf32> to vector<32x512xf32>
    %32 = arith.mulf %30, %31 : vector<32x512xf32>
    %33 = arith.addf %27, %32 : vector<32x512xf32>
    %34 = vector.extract_strided_slice %10 {offsets = [0, 4], sizes = [32, 1], strides = [1, 1]} : vector<32x5xf32> to vector<32x1xf32>
    %35 = vector.broadcast %34 : vector<32x1xf32> to vector<32x512xf32>
    %36 = arith.addf %33, %35 : vector<32x512xf32>
    %cst = arith.constant 0.000000e+00 : f32
    %37 = vector.broadcast %cst : f32 to vector<32x512xf32>
    %38 = arith.maximumf %36, %37 : vector<32x512xf32>
    %c0_7 = arith.constant 0 : index
    %c0_8 = arith.constant 0 : index
    %39 = vector.load %arg4[%c0_7, %c0_8] : memref<8x32xf32, #tpu.memory_space<vmem>>, vector<8x32xf32>
    %cst_9 = arith.constant dense<0.000000e+00> : vector<8x512xf32>
    %40 = tpu.matmul %39, %38, %cst_9 {dimension_numbers = #tpu.dot_dimension_numbers<[1], [0], [0], [1], [0, 0, 1, 1], [], []>} : vector<8x32xf32>, vector<32x512xf32>, vector<8x512xf32> -> vector<8x512xf32>
    %c0_10 = arith.constant 0 : index
    %c0_11 = arith.constant 0 : index
    %41 = vector.load %arg5[%c0_10, %c0_11] : memref<8x2xf32, #tpu.memory_space<vmem>>, vector<8x1xf32>
    %42 = vector.broadcast %41 : vector<8x1xf32> to vector<8x512xf32>
    %43 = arith.addf %40, %42 : vector<8x512xf32>
    %44 = vector.extract_strided_slice %43 {offsets = [0, 0], sizes = [4, 512], strides = [1, 1]} : vector<8x512xf32> to vector<4x512xf32>
    %45 = vector.extract_strided_slice %43 {offsets = [4, 0], sizes = [4, 512], strides = [1, 1]} : vector<8x512xf32> to vector<4x512xf32>
    %c0_12 = arith.constant 0 : index
    %c1_13 = arith.constant 1 : index
    %46 = vector.load %arg5[%c0_12, %c1_13] : memref<8x2xf32, #tpu.memory_space<vmem>>, vector<4x1xf32>
    %c4 = arith.constant 4 : index
    %c1_14 = arith.constant 1 : index
    %47 = vector.load %arg5[%c4, %c1_14] : memref<8x2xf32, #tpu.memory_space<vmem>>, vector<4x1xf32>
    %48 = vector.broadcast %46 : vector<4x1xf32> to vector<4x512xf32>
    %49 = arith.mulf %44, %48 : vector<4x512xf32>
    %50 = math.tanh %49 : vector<4x512xf32>
    %51 = vector.broadcast %47 : vector<4x1xf32> to vector<4x512xf32>
    %52 = arith.mulf %50, %51 : vector<4x512xf32>
    %53 = vector.broadcast %7 : vector<1x512xf32> to vector<4x512xf32>
    %54 = arith.mulf %53, %52 : vector<4x512xf32>
    %55 = vector.broadcast %7 : vector<1x512xf32> to vector<4x512xf32>
    %56 = arith.mulf %55, %45 : vector<4x512xf32>
    %57 = arith.addf %5, %56 : vector<4x512xf32>
    %58 = math.exp %54 : vector<4x512xf32>
    %59 = arith.mulf %57, %58 : vector<4x512xf32>
    %60 = vector.extract_strided_slice %59 {offsets = [0, 0], sizes = [4, 256], strides = [1, 1]} : vector<4x512xf32> to vector<4x256xf32>
    %c0_15 = arith.constant 0 : index
    %c0_16 = arith.constant 0 : index
    %c0_17 = arith.constant 0 : index
    %61 = vector.load %arg6[%c0_15, %c0_16, %c0_17] : memref<2x4x256xf32, #tpu.memory_space<vmem>>, vector<1x4x256xf32>
    %62 = vector.shape_cast %61 : vector<1x4x256xf32> to vector<4x256xf32>
    %63 = vector.shape_cast %60 : vector<4x256xf32> to vector<1x4x256xf32>
    tpu.vector_store %arg6[%c0_15, %c0_16, %c0_17], %63 {strides = array<i32>} : memref<2x4x256xf32, #tpu.memory_space<vmem>>, vector<1x4x256xf32>,
    %64 = vector.extract_strided_slice %54 {offsets = [0, 0], sizes = [4, 256], strides = [1, 1]} : vector<4x512xf32> to vector<4x256xf32>
    %65 = vector.shape_cast %64 : vector<4x256xf32> to vector<1x4x256xf32>
    %cst_18 = arith.constant dense<0.000000e+00> : vector<1xf32>
    %66 = vector.multi_reduction <add>, %65, %cst_18 [1, 2] : vector<1x4x256xf32> to vector<1xf32>
    %67 = vector.shape_cast %66 : vector<1xf32> to vector<1x1x1xf32>
    %68 = vector.extract %67[0, 0, 0] : f32 from vector<1x1x1xf32>
    %c0_19 = arith.constant 0 : index
    %69 = memref.load %arg7[%c0_19] : memref<2xf32, #tpu.memory_space<smem>>
    memref.store %68, %arg7[%c0_19] : memref<2xf32, #tpu.memory_space<smem>>
    %70 = vector.extract_strided_slice %59 {offsets = [0, 256], sizes = [4, 256], strides = [1, 1]} : vector<4x512xf32> to vector<4x256xf32>
    %c1_20 = arith.constant 1 : index
    %c0_21 = arith.constant 0 : index
    %c0_22 = arith.constant 0 : index
    %71 = vector.load %arg6[%c1_20, %c0_21, %c0_22] : memref<2x4x256xf32, #tpu.memory_space<vmem>>, vector<1x4x256xf32>
    %72 = vector.shape_cast %71 : vector<1x4x256xf32> to vector<4x256xf32>
    %73 = vector.shape_cast %70 : vector<4x256xf32> to vector<1x4x256xf32>
    tpu.vector_store %arg6[%c1_20, %c0_21, %c0_22], %73 {strides = array<i32>} : memref<2x4x256xf32, #tpu.memory_space<vmem>>, vector<1x4x256xf32>,
    %74 = vector.extract_strided_slice %54 {offsets = [0, 256], sizes = [4, 256], strides = [1, 1]} : vector<4x512xf32> to vector<4x256xf32>
    %75 = vector.shape_cast %74 : vector<4x256xf32> to vector<1x4x256xf32>
    %cst_23 = arith.constant dense<0.000000e+00> : vector<1xf32>
    %76 = vector.multi_reduction <add>, %75, %cst_23 [1, 2] : vector<1x4x256xf32> to vector<1xf32>
    %77 = vector.shape_cast %76 : vector<1xf32> to vector<1x1x1xf32>
    %78 = vector.extract %77[0, 0, 0] : f32 from vector<1x1x1xf32>
    %c1_24 = arith.constant 1 : index
    %79 = memref.load %arg7[%c1_24] : memref<2xf32, #tpu.memory_space<smem>>
    memref.store %78, %arg7[%c1_24] : memref<2xf32, #tpu.memory_space<smem>>
    return
  }
  func.func @transform_0(%arg0: i32) -> (i32, i32, i32) {
    %c0_i32 = arith.constant 0 : i32
    %c0_i32_0 = arith.constant 0 : i32
    %c0_i32_1 = arith.constant 0 : i32
    %c0_i32_2 = arith.constant 0 : i32
    return %c0_i32, %c0_i32_0, %c0_i32_1 : i32, i32, i32
  }
  func.func @transform_1(%arg0: i32) -> (i32, i32) {
    %c0_i32 = arith.constant 0 : i32
    %c0_i32_0 = arith.constant 0 : i32
    %c0_i32_1 = arith.constant 0 : i32
    return %c0_i32, %c0_i32_0 : i32, i32
  }
  func.func @transform_2(%arg0: i32) -> (i32, i32) {
    %c0_i32 = arith.constant 0 : i32
    %c0_i32_0 = arith.constant 0 : i32
    %c0_i32_1 = arith.constant 0 : i32
    return %c0_i32, %c0_i32_0 : i32, i32
  }
  func.func @transform_3(%arg0: i32) -> (i32, i32) {
    %c0_i32 = arith.constant 0 : i32
    %c0_i32_0 = arith.constant 0 : i32
    %c0_i32_1 = arith.constant 0 : i32
    return %c0_i32, %c0_i32_0 : i32, i32
  }
  func.func @transform_4(%arg0: i32) -> (i32, i32) {
    %c0_i32 = arith.constant 0 : i32
    %c0_i32_0 = arith.constant 0 : i32
    %c0_i32_1 = arith.constant 0 : i32
    return %c0_i32, %c0_i32_0 : i32, i32
  }
  func.func @transform_5(%arg0: i32) -> (i32, i32, i32) {
    %c0_i32 = arith.constant 0 : i32
    %c0_i32_0 = arith.constant 0 : i32
    %c0_i32_1 = arith.constant 0 : i32
    %c0_i32_2 = arith.constant 0 : i32
    return %c0_i32, %c0_i32_0, %c0_i32_1 : i32, i32, i32
  }
  func.func @transform_6(%arg0: i32) -> i32 {
    %c0_i32 = arith.constant 0 : i32
    %c0_i32_0 = arith.constant 0 : i32
    return %c0_i32 : i32
  }
}

</mosaic_0001>

<bundles_post_ra>
// kernel: tpu_custom_call.1
= control target key start
LH: loop header
LB: loop body
LE: loop exit
PB: predicated region body
PF: predicated region fallthrough
CT: control target
= control target key end

     0   :  { %12 = vsyncpa [#allocation3], 0  ;;  %v632_v2 = vmov 2   ;;  %v633_v3 = vmov 0   ;;  %s866_s0 = inlined_call_operand.vmem [shape: f32[2,4,256], index: 0, kind: input, shape index: {}]   ;;  %s867_s1 = inlined_call_operand.vmem [shape: f32[2,512], index: 1, kind: input, shape index: {}]   ;;  %s868_s2 = inlined_call_operand.vmem [shape: f32[32,5], index: 2, kind: input, shape index: {}]   ;;  %s869_s3 = inlined_call_operand.vmem [shape: f32[8,32], index: 3, kind: input, shape index: {}]   ;;  %s870_s4 = inlined_call_operand.vmem [shape: f32[8,2], index: 4, kind: input, shape index: {}]   ;;  %s871_s5 = inlined_call_operand.hbm [shape: f32[2,4,256], index: 5, kind: output, shape index: {0}]   ;;  %s872_s6 = inlined_call_operand.hbm [shape: f32[2], index: 6, kind: output, shape index: {1}]  }
   0x1   :  { %v57_v0 = vld [vmem:[%s868_s2 + $0x18] sm:$0xff]  ;;  %v56_v1 = vld [vmem:[%s868_s2 + $0x10] sm:$0xff]  ;;  %559 = vset.pattern.permute.xlu2 %v632_v2  ;;  %557 = vset.pattern.permute.xlu1 %v633_v3 }
   0x2   :  { %13 = vsyncpa [#allocation4], 0  ;;  %555 = vset.pattern.permute.xlu0 %v633_v3  ;;  %163 = vperm.xlu2 %559, %v57_v0   ;;  %v55_v4 = vld [vmem:[%s868_s2 + $0x8] sm:$0xff]  ;;  %v634_v5 = vmov 1   ;;  %v635_v6 = vmov 3   ;;  %v54_v7 = vld [vmem:[%s868_s2] sm:$0xff] }
   0x3   :  { %75 = vperm.xlu0 %555, %v57_v0   ;;  %70 = vperm.xlu1 %557, %v56_v1   ;;  %v636_v8 = vmov 4   ;;  %v24_v9 = vld [vmem:[%s866_s0] sm:$0xff]  ;;  %v25_v10 = vld [vmem:[%s866_s0 + $0x8] sm:$0xff]  ;;  %vm309_vm0 = vcmask 261120   ;;  %vm465_vm1 = vcmask 1043456   ;;  %s510_s18 = sshll.u32 %s871_s5, 4  ;;  %s511_s18 = int_to_ptr.hbm [resolvable:$true] %s510_s18 }
   0x4   :  { %27 = vst [vmem:[#allocation1] ss:$2 sm:$0xff] %v24_v9  ;;  %v38_v16 = vld [vmem:[%s867_s1] ss:$2 sm:$0xf]  ;;  %s637_s19 = smov [#allocation2]  }
   0x5   :  { %v42_v17 = vperm.slane %v38_v16, 0  ;;  %v43_v18 = vperm.slane %v38_v16, 1  ;;  %v44_v19 = vperm.slane %v38_v16, 2  ;;  %v45_v20 = vperm.slane %v38_v16, 3  ;;  %s508_s20 = sshll.u32 %s637_s19, 4  ;;  %s638_s21 = smov 128   ;;  %s509_s20 = int_to_ptr.vmem [resolvable:$true] %s508_s20 }
   0x6   :  { %s639_s22 = smov 8   ;;  %s522_s25 = sshll.u32 %s872_s6, 4  ;;  %s523_s25 = int_to_ptr.hbm [resolvable:$true] %s522_s25 }
   0x7   :  { %s640_s27 = smov [#allocation5]  }
   0xa   :  { %560 = vset.pattern.permute.xlu2 %v633_v3 }
   0xb   :  { %556 = vset.pattern.permute.xlu0 %v634_v5  ;;  %558 = vset.pattern.permute.xlu1 %v634_v5  ;;  %v698_v11 = vld.sshfl [vmem:[#allocation1] sm:$0xff pattern:$0x75316420]  ;;  %v700_v12 = vld.sshfl [vmem:[#allocation1 + $0x8] sm:$0xff pattern:$0x75316420] }
   0xc   :  { %111 = vperm.xlu0 %556, %v57_v0   ;;  %107 = vperm.xlu1 %558, %v56_v1   ;;  %33 = vst [vmem:[#allocation1] ss:$2 sm:$0xff] %v25_v10  ;;  %v50_v25 = vmul.f32 %v42_v17, %v698_v11  ;;  %v51_v26 = vmul.f32 %v43_v18, %v700_v12 }
   0xd   :  { %65 = vperm.xlu2 %560, %v55_v4  }
   0xe   :  { %v718_v30 = vperm.slane %v50_v25, 1  ;;  %v720_v31 = vperm.slane %v51_v26, 1  ;;  %v726_v34 = vperm.slane %v50_v25, 0  ;;  %v728_v35 = vperm.slane %v51_v26, 0 }
   0xf   :  { %v734_v38 = vperm.slane %v50_v25, 2  ;;  %v736_v39 = vperm.slane %v51_v26, 2  ;;  %v754_v57 = vperm.slane %v50_v25, 3  ;;  %v756_v58 = vperm.slane %v51_v26, 3 }
  0x13   :  { %v708_v21 = vld.sshfl [vmem:[#allocation1] sm:$0xff pattern:$0x75316420]  ;;  %v710_v22 = vld.sshfl [vmem:[#allocation1 + $0x8] sm:$0xff pattern:$0x75316420] }
  0x14   :  { %562 = vset.pattern.permute.xlu0 %v635_v6  ;;  %103 = vperm.xlu1 %558, %v55_v4   ;;  %v52_v27 = vmul.f32 %v44_v19, %v708_v21  ;;  %v53_v28 = vmul.f32 %v45_v20, %v710_v22 }
  0x15   :  { %561 = vset.pattern.permute.xlu2 %v632_v2  ;;  %215 = vperm.xlu0 %562, %v57_v0  }
  0x16   :  { %159 = vperm.xlu2 %561, %v56_v1   ;;  %v722_v32 = vperm.slane %v52_v27, 1  ;;  %v724_v33 = vperm.slane %v53_v28, 1  ;;  %v730_v36 = vperm.slane %v52_v27, 0  ;;  %v732_v37 = vperm.slane %v53_v28, 0 }
  0x17   :  { %v738_v40 = vperm.slane %v52_v27, 2  ;;  %v740_v41 = vperm.slane %v53_v28, 2  ;;  %v758_v59 = vperm.slane %v52_v27, 3  ;;  %v760_v60 = vperm.slane %v53_v28, 3 }
  0x1c   :  { %563 = vset.pattern.permute.xlu1 %v633_v3 }
  0x1d   :  { %60 = vperm.xlu1 %563, %v54_v7   ;;  %567 = vset.pattern.permute.xlu0 %v632_v2 }
  0x1e   :  { %564 = vset.pattern.permute.xlu2 %v634_v5  ;;  %151 = vperm.xlu0 %567, %v54_v7  }
  0x1f   :  { %99 = vperm.xlu2 %564, %v54_v7  }
  0x25   :  { %565 = vset.pattern.permute.xlu1 %v632_v2 }
  0x26   :  { %155 = vperm.xlu1 %565, %v55_v4   ;;  %570 = vset.pattern.permute.xlu0 %v636_v8 }
  0x27   :  { %566 = vset.pattern.permute.xlu2 %v635_v6  ;;  %259 = vperm.xlu0 %570, %v55_v4  }
  0x28   :  { %211 = vperm.xlu2 %566, %v56_v1  }
  0x2e   :  { %568 = vset.pattern.permute.xlu1 %v635_v6 }
  0x2f   :  { %207 = vperm.xlu1 %568, %v55_v4   ;;  %575 = vset.pattern.permute.xlu0 %v634_v5 }
  0x30   :  { %569 = vset.pattern.permute.xlu2 %v636_v8 }
  0x31   :  { %267 = vperm.xlu2 %569, %v57_v0  }
  0x37   :  { %203 = vperm.xlu1 %568, %v54_v7  }
  0x39   :  { %263 = vperm.xlu2 %569, %v56_v1  }
  0x3f   :  { %571 = vset.pattern.permute.xlu1 %v636_v8 }
  0x40   :  { %255 = vperm.xlu1 %571, %v54_v7  }
  0x41   :  { %572 = vset.pattern.permute.xlu2 %v633_v3 }
  0x48   :  { %573 = vset.pattern.permute.xlu1 %v634_v5 }
  0x5c   :  { %v164_v13 = vpop.permute.xlu2 %163 }
  0x5d   :  { %v182_v52 = vmul.f32 %v734_v38, %v164_v13  ;;  %v183_v53 = vmul.f32 %v736_v39, %v164_v13  ;;  %v184_v54 = vmul.f32 %v738_v40, %v164_v13  ;;  %v185_v55 = vmul.f32 %v740_v41, %v164_v13 }
  0x67   :  { %v703_v14 = vpop.permute.xlu2 %65 }
  0x70   :  { %v160_v15 = vpop.permute.xlu2 %159 }
  0x71   :  { %v178_v1 = vmul.f32 %v734_v38, %v160_v15  ;;  %v179_v2 = vmul.f32 %v736_v39, %v160_v15  ;;  %v180_v3 = vmul.f32 %v738_v40, %v160_v15  ;;  %v181_v4 = vmul.f32 %v740_v41, %v160_v15 }
  0x75   :  { %v71_v23 = vpop.permute.xlu1 %70  ;;  %v76_v24 = vpop.permute.xlu0 %75 }
  0x76   :  { %v94_v42 = vmul.f32 %v726_v34, %v76_v24  ;;  %v95_v43 = vmul.f32 %v728_v35, %v76_v24  ;;  %v96_v44 = vmul.f32 %v730_v36, %v76_v24  ;;  %v97_v45 = vmul.f32 %v732_v37, %v76_v24 }
  0x77   :  { %v90_v10 = vmul.f32 %v726_v34, %v71_v23  ;;  %v91_v13 = vmul.f32 %v728_v35, %v71_v23  ;;  %v92_v16 = vmul.f32 %v730_v36, %v71_v23  ;;  %v93_v17 = vmul.f32 %v732_v37, %v71_v23 }
  0x79   :  { %v716_v29 = vpop.permute.xlu2 %99 }
  0x7e   :  { %v112_v46 = vpop.permute.xlu0 %111  ;;  %v108_v47 = vpop.permute.xlu1 %107 }
  0x7f   :  { %v130_v48 = vmul.f32 %v718_v30, %v112_v46  ;;  %v131_v49 = vmul.f32 %v720_v31, %v112_v46  ;;  %v132_v50 = vmul.f32 %v722_v32, %v112_v46  ;;  %v133_v51 = vmul.f32 %v724_v33, %v112_v46 }
  0x80   :  { %v126_v6 = vmul.f32 %v718_v30, %v108_v47  ;;  %v127_v7 = vmul.f32 %v720_v31, %v108_v47  ;;  %v128_v8 = vmul.f32 %v722_v32, %v108_v47  ;;  %v129_v9 = vmul.f32 %v724_v33, %v108_v47 }
  0x81   :  { %v146_v61 = vadd.f32 %v130_v48, %v94_v42  ;;  %v147_v62 = vadd.f32 %v131_v49, %v95_v43  ;;  %v148_v63 = vadd.f32 %v132_v50, %v96_v44  ;;  %v149_v0 = vadd.f32 %v133_v51, %v97_v45 }
  0x82   :  { %v212_v56 = vpop.permute.xlu2 %211  ;;  %v142_v43 = vadd.f32 %v126_v6, %v90_v10  ;;  %v143_v44 = vadd.f32 %v127_v7, %v91_v13  ;;  %v144_v45 = vadd.f32 %v128_v8, %v92_v16  ;;  %v145_v46 = vadd.f32 %v129_v9, %v93_v17 }
  0x83   :  { %v198_v15 = vadd.f32 %v182_v52, %v146_v61  ;;  %v199_v20 = vadd.f32 %v183_v53, %v147_v62  ;;  %v200_v24 = vadd.f32 %v184_v54, %v148_v63  ;;  %v201_v25 = vadd.f32 %v185_v55, %v149_v0 }
  0x84   :  { %v230_v50 = vmul.f32 %v754_v57, %v212_v56  ;;  %v231_v51 = vmul.f32 %v756_v58, %v212_v56  ;;  %v232_v52 = vmul.f32 %v758_v59, %v212_v56  ;;  %v233_v53 = vmul.f32 %v760_v60, %v212_v56 }
  0x85   :  { %v194_v0 = vadd.f32 %v178_v1, %v142_v43  ;;  %v195_v6 = vadd.f32 %v179_v2, %v143_v44  ;;  %v196_v7 = vadd.f32 %v180_v3, %v144_v45  ;;  %v197_v8 = vadd.f32 %v181_v4, %v145_v46  ;;  %v393_v44 = vld [vmem:[%s870_s4] sm:$0xf] }
  0x86   :  { %v774_v18 = vpop.permute.xlu1 %103  ;;  %v303_v45 = vld [vmem:[%s870_s4] sm:$0xff]  ;;  %397 = vperm.xlu1 %573, %v393_v44   ;;  %v121_v44 = vmul.f32 %v724_v33, %v716_v29 }
  0x87   :  { %v216_v19 = vpop.permute.xlu0 %215  ;;  %v246_v56 = vadd.f32 %v230_v50, %v194_v0  ;;  %v122_v43 = vmul.f32 %v718_v30, %v774_v18  ;;  %v123_v46 = vmul.f32 %v720_v31, %v774_v18  ;;  %306 = vperm.xlu2 %572, %v303_v45   ;;  %v87_v50 = vmul.f32 %v728_v35, %v703_v14 }
  0x88   :  { %v234_v26 = vmul.f32 %v754_v57, %v216_v19  ;;  %v235_v27 = vmul.f32 %v756_v58, %v216_v19  ;;  %v236_v28 = vmul.f32 %v758_v59, %v216_v19  ;;  %v237_v42 = vmul.f32 %v760_v60, %v216_v19 }
  0x89   :  { %v247_v19 = vadd.f32 %v231_v51, %v195_v6  ;;  %v88_v51 = vmul.f32 %v730_v36, %v703_v14 }
  0x8a   :  { %v250_v23 = vadd.f32 %v234_v26, %v198_v15  ;;  %v251_v47 = vadd.f32 %v235_v27, %v199_v20  ;;  %v252_v48 = vadd.f32 %v236_v28, %v200_v24  ;;  %v253_v49 = vadd.f32 %v237_v42, %v201_v25 }
  0x8b   :  { %v268_v54 = vpop.permute.xlu2 %267  ;;  %v248_v15 = vadd.f32 %v232_v52, %v196_v7  ;;  %v249_v20 = vadd.f32 %v233_v53, %v197_v8  ;;  %v89_v52 = vmul.f32 %v732_v37, %v703_v14 }
  0x8c   :  { %v282_v55 = vadd.f32 %v268_v54, %v250_v23  ;;  %v283_v61 = vadd.f32 %v268_v54, %v251_v47  ;;  %v284_v62 = vadd.f32 %v268_v54, %v252_v48  ;;  %v285_v63 = vadd.f32 %v268_v54, %v253_v49 }
  0x8d   :  { %v124_v23 = vmul.f32 %v722_v32, %v774_v18  ;;  %v125_v47 = vmul.f32 %v724_v33, %v774_v18  ;;  %v86_v49 = vmul.f32 %v726_v34, %v703_v14  ;;  %v394_v14 = vld [vmem:[%s870_s4 + $0x4] sm:$0xf] }
  0x8e   :  { %v298_v9 = vmax.f32 %v282_v55, 0.0  ;;  %v299_v10 = vmax.f32 %v283_v61, 0.0  ;;  %v300_v13 = vmax.f32 %v284_v62, 0.0  ;;  %v301_v16 = vmax.f32 %v285_v63, 0.0 }
  0x8f   :  { %v784_v17 = vpop.permute.xlu1 %60  ;;  %v138_v61 = vadd.f32 %v122_v43, %v86_v49  ;;  %v139_v62 = vadd.f32 %v123_v46, %v87_v50  ;;  %v140_v63 = vadd.f32 %v124_v23, %v88_v51  ;;  %v141_v0 = vadd.f32 %v125_v47, %v89_v52  ;;  %574 = vset.pattern.permute.xlu2 %v634_v5 }
  0x90   :  { %325 = vmatpush.msra.mxu0 %v298_v9  ;;  %345 = vmatpush.msra.mxu1 %v299_v10  ;;  %v152_v48 = vpop.permute.xlu0 %151  ;;  %v120_v43 = vmul.f32 %v722_v32, %v716_v29 }
  0x91   :  { %365 = vmatpush.msra.mxu2 %v300_v13  ;;  %385 = vmatpush.msra.mxu3 %v301_v16  ;;  %v170_v23 = vmul.f32 %v734_v38, %v152_v48  ;;  %v171_v32 = vmul.f32 %v736_v39, %v152_v48  ;;  %v172_v51 = vmul.f32 %v738_v40, %v152_v48 }
  0x92   :  { %410 = vperm.xlu2 %574, %v394_v14  }
  0x93   :  { %v264_v24 = vpop.permute.xlu2 %263 }
  0x94   :  { %v278_v25 = vadd.f32 %v264_v24, %v246_v56  ;;  %v279_v1 = vadd.f32 %v264_v24, %v247_v19  ;;  %v280_v2 = vadd.f32 %v264_v24, %v248_v15  ;;  %v281_v3 = vadd.f32 %v264_v24, %v249_v20 }
  0x96   :  { %v294_v4 = vmax.f32 %v278_v25, 0.0  ;;  %v295_v26 = vmax.f32 %v279_v1, 0.0  ;;  %v296_v27 = vmax.f32 %v280_v2, 0.0  ;;  %v297_v28 = vmax.f32 %v281_v3, 0.0 }
  0x97   :  { %v118_v2 = vmul.f32 %v718_v30, %v716_v29  ;;  %v119_v3 = vmul.f32 %v720_v31, %v716_v29  ;;  %v84_v30 = vmul.f32 %v730_v36, %v784_v17  ;;  %v85_v31 = vmul.f32 %v732_v37, %v784_v17 }
  0x98   :  { %326 = vmatpush.msra.mxu0 %v294_v4  ;;  %346 = vmatpush.msra.mxu1 %v295_v26  ;;  %v156_v42 = vpop.permute.xlu1 %155  ;;  %v82_v4 = vmul.f32 %v726_v34, %v784_v17  ;;  %v83_v26 = vmul.f32 %v728_v35, %v784_v17  ;;  %v173_v36 = vmul.f32 %v740_v41, %v152_v48 }
  0x99   :  { %366 = vmatpush.msra.mxu2 %v296_v27  ;;  %386 = vmatpush.msra.mxu3 %v297_v28  ;;  %v174_v53 = vmul.f32 %v734_v38, %v156_v42  ;;  %v175_v54 = vmul.f32 %v736_v39, %v156_v42  ;;  %v176_v18 = vmul.f32 %v738_v40, %v156_v42  ;;  %v260_v15 = vpop.permute.xlu0 %259 }
  0x9a   :  { %v177_v55 = vmul.f32 %v740_v41, %v156_v42  ;;  %v134_v49 = vadd.f32 %v118_v2, %v82_v4  ;;  %v135_v50 = vadd.f32 %v119_v3, %v83_v26  ;;  %v136_v29 = vadd.f32 %v120_v43, %v84_v30 }
  0x9b   :  { %v190_v7 = vadd.f32 %v174_v53, %v138_v61  ;;  %v191_v8 = vadd.f32 %v175_v54, %v139_v62  ;;  %v192_v9 = vadd.f32 %v176_v18, %v140_v63  ;;  %v137_v33 = vadd.f32 %v121_v44, %v85_v31 }
  0x9c   :  { %v193_v10 = vadd.f32 %v177_v55, %v141_v0  ;;  %v186_v53 = vadd.f32 %v170_v23, %v134_v49  ;;  %v187_v39 = vadd.f32 %v171_v32, %v135_v50  ;;  %v188_v54 = vadd.f32 %v172_v51, %v136_v29 }
  0x9d   :  { %v189_v40 = vadd.f32 %v173_v36, %v137_v33 }
  0xa1   :  { %v208_v6 = vpop.permute.xlu1 %207 }
  0xa2   :  { %v226_v13 = vmul.f32 %v754_v57, %v208_v6  ;;  %v227_v16 = vmul.f32 %v756_v58, %v208_v6  ;;  %v228_v56 = vmul.f32 %v758_v59, %v208_v6  ;;  %v229_v19 = vmul.f32 %v760_v60, %v208_v6 }
  0xa4   :  { %v242_v20 = vadd.f32 %v226_v13, %v190_v7  ;;  %v243_v24 = vadd.f32 %v227_v16, %v191_v8  ;;  %v244_v25 = vadd.f32 %v228_v56, %v192_v9  ;;  %v245_v1 = vadd.f32 %v229_v19, %v193_v10 }
  0xa6   :  { %v274_v27 = vadd.f32 %v260_v15, %v242_v20  ;;  %v275_v28 = vadd.f32 %v260_v15, %v243_v24  ;;  %v276_v5 = vadd.f32 %v260_v15, %v244_v25  ;;  %v277_v42 = vadd.f32 %v260_v15, %v245_v1  ;;  %v537_v1 = vld [vmem:[%s867_s1 + $0x1] ss:$2 sm:$0xf] }
  0xa7   :  { %v420_v32 = vperm.slane %v537_v1, 2  ;;  %v421_v51 = vperm.slane %v537_v1, 3 }
  0xa8   :  { %v290_v34 = vmax.f32 %v274_v27, 0.0  ;;  %v291_v45 = vmax.f32 %v275_v28, 0.0  ;;  %v292_v46 = vmax.f32 %v276_v5, 0.0  ;;  %v293_v35 = vmax.f32 %v277_v42, 0.0 }
  0xa9   :  { %v204_v47 = vpop.permute.xlu1 %203  ;;  %v418_v28 = vperm.slane %v537_v1, 0  ;;  %v419_v5 = vperm.slane %v537_v1, 1 }
  0xaa   :  { %327 = vmatpush.msra.mxu0 %v290_v34  ;;  %347 = vmatpush.msra.mxu1 %v291_v45  ;;  %v222_v37 = vmul.f32 %v754_v57, %v204_v47  ;;  %v223_v17 = vmul.f32 %v756_v58, %v204_v47  ;;  %v224_v38 = vmul.f32 %v758_v59, %v204_v47  ;;  %v302_v59 = vld [vmem:[%s869_s3] sm:$0xff] }
  0xab   :  { %367 = vmatpush.msra.mxu2 %v292_v46  ;;  %387 = vmatpush.msra.mxu3 %v293_v35  ;;  %v225_v52 = vmul.f32 %v760_v60, %v204_v47 }
  0xac   :  { %v238_v18 = vadd.f32 %v222_v37, %v186_v53  ;;  %v239_v55 = vadd.f32 %v223_v17, %v187_v39  ;;  %v240_v61 = vadd.f32 %v224_v38, %v188_v54 }
  0xad   :  { %v241_v62 = vadd.f32 %v225_v52, %v189_v40 }
  0xb2   :  { %v256_v41 = vpop.permute.xlu1 %255 }
  0xb3   :  { %v270_v48 = vadd.f32 %v256_v41, %v238_v18  ;;  %v271_v63 = vadd.f32 %v256_v41, %v239_v55  ;;  %v272_v0 = vadd.f32 %v256_v41, %v240_v61  ;;  %v273_v6 = vadd.f32 %v256_v41, %v241_v62 }
  0xb5   :  { %v286_v57 = vmax.f32 %v270_v48, 0.0  ;;  %v287_v7 = vmax.f32 %v271_v63, 0.0  ;;  %v288_v58 = vmax.f32 %v272_v0, 0.0  ;;  %v289_v8 = vmax.f32 %v273_v6, 0.0 }
  0xb7   :  { %328 = vmatpush.msra.mxu0 %v286_v57  ;;  %348 = vmatpush.msra.mxu1 %v287_v7 }
  0xb8   :  { %368 = vmatpush.msra.mxu2 %v288_v58  ;;  %388 = vmatpush.msra.mxu3 %v289_v8 }
  0xb9   :  { %538 = vmatmul.msk.f32.vlgmr.msra.gmra.mxu0 %vm309_vm0, %v302_v59  ;;  %539 = vmatmul.msk.f32.vlgmr.msra.gmra.mxu1 %vm309_vm0, %v302_v59 }
  0xba   :  { %540 = vmatmul.msk.f32.vlgmr.msra.gmra.mxu2 %vm309_vm0, %v302_v59  ;;  %541 = vmatmul.msk.f32.vlgmr.msra.gmra.mxu3 %vm309_vm0, %v302_v59 }
  0xe1   :  { %v307_v60 = vpop.permute.xlu2 %306 }
  0xec   :  { %v411_v2 = vpop.permute.xlu2 %410 }
  0xf8   :  { %v398_v9 = vpop.permute.xlu1 %397 }
 0x136   :  { %v330_v10 = vpop.f32.mrf.mxu0  ;;  %v350_v14 = vpop.f32.mrf.mxu1 }
 0x137   :  { %v331_v13 = vadd.f32 %v330_v10, %v307_v60  ;;  %v351_v16 = vadd.f32 %v350_v14, %v307_v60 }
 0x139   :  { %v400_v56 = vmul.f32 %v398_v9, %v331_v13  ;;  %v401_v19 = vmul.f32 %v398_v9, %v351_v16  ;;  %v431_v31 = vmul.f32 %v419_v5, %v351_v16  ;;  %v430_v47 = vmul.f32 %v418_v28, %v331_v13 }
 0x13b   :  { %576 = vtanh.f32 %v400_v56  ;;  %v439_v33 = vrot.slane %v431_v31, 4  ;;  %v438_v17 = vrot.slane %v430_v47, 4 }
 0x13c   :  { %578 = vtanh.f32 %v401_v19 }
 0x13d   :  { %v370_v15 = vpop.f32.mrf.mxu2  ;;  %v390_v20 = vpop.f32.mrf.mxu3  ;;  %v447_v40 = vadd.f32 %v439_v33, %v700_v12  ;;  %v446_v48 = vadd.f32 %v438_v17, %v698_v11 }
 0x13e   :  { %v371_v24 = vadd.f32 %v370_v15, %v307_v60  ;;  %v391_v25 = vadd.f32 %v390_v20, %v307_v60 }
 0x140   :  { %v402_v3 = vmul.f32 %v398_v9, %v371_v24  ;;  %v403_v4 = vmul.f32 %v398_v9, %v391_v25  ;;  %v433_v52 = vmul.f32 %v421_v51, %v391_v25  ;;  %v432_v62 = vmul.f32 %v420_v32, %v371_v24 }
 0x141   :  { %v577_v26 = vpop.eup %576 }
 0x142   :  { %v579_v27 = vpop.eup %578  ;;  %580 = vtanh.f32 %v402_v3  ;;  %v413_v42 = vmul.f32 %v577_v26, %v411_v2  ;;  %v441_v0 = vrot.slane %v433_v52, 4  ;;  %v440_v7 = vrot.slane %v432_v62, 4 }
 0x143   :  { %582 = vtanh.f32 %v403_v4  ;;  %v414_v43 = vmul.f32 %v579_v27, %v411_v2 }
 0x144   :  { %v426_v44 = vmul.f32 %v418_v28, %v413_v42  ;;  %v449_v12 = vadd.f32 %v441_v0, %v710_v22  ;;  %v448_v60 = vadd.f32 %v440_v7, %v708_v21 }
 0x145   :  { %v427_v30 = vmul.f32 %v419_v5, %v414_v43 }
 0x146   :  { %v469_v34 = vsel %vm465_vm1, %v426_v44, 0.0  ;;  %v450_v45 = vmul.f32 1.442695, %v426_v44 }
 0x147   :  { %v452_v46 = vmul.f32 1.442695, %v427_v30  ;;  %v470_v35 = vsel %vm465_vm1, %v427_v30, 0.0 }
 0x148   :  { %v581_v23 = vpop.eup %580  ;;  %v471_v49 = vadd.f32 %v470_v35, %v469_v34  ;;  %584 = vpow2.f32 %v450_v45 }
 0x149   :  { %v583_v50 = vpop.eup %582  ;;  %v415_v29 = vmul.f32 %v581_v23, %v411_v2  ;;  %586 = vpow2.f32 %v452_v46 }
 0x14a   :  { %v416_v36 = vmul.f32 %v583_v50, %v411_v2  ;;  %472 = vadd.xlane.f32.xlu0 %v471_v49 }
 0x14b   :  { %v428_v37 = vmul.f32 %v420_v32, %v415_v29 }
 0x14c   :  { %v429_v38 = vmul.f32 %v421_v51, %v416_v36 }
 0x14d   :  { %v490_v53 = vsel %vm465_vm1, %v428_v37, 0.0  ;;  %v454_v39 = vmul.f32 1.442695, %v428_v37 }
 0x14e   :  { %v585_v54 = vpop.eup %584  ;;  %v456_v18 = vmul.f32 1.442695, %v429_v38  ;;  %v491_v55 = vsel %vm465_vm1, %v429_v38, 0.0 }
 0x14f   :  { %v587_v61 = vpop.eup %586  ;;  %v492_v41 = vadd.f32 %v491_v55, %v490_v53  ;;  %588 = vpow2.f32 %v454_v39  ;;  %v458_v6 = vmul.f32 %v585_v54, %v446_v48 }
 0x150   :  { %590 = vpow2.f32 %v456_v18  ;;  %v459_v63 = vmul.f32 %v587_v61, %v447_v40 }
 0x151   :  { %493 = vadd.xlane.f32.xlu1 %v492_v41 }
 0x152   :  { %v464_v57 = vrot.slane %v459_v63, 4 }
 0x154   :  { %v466_v58 = vsel %vm465_vm1, %v458_v6, %v464_v57 }
 0x155   :  { %v589_v8 = vpop.eup %588  ;;  %468 = vst [vmem:[#allocation2] sm:$0xff] %v466_v58 }
 0x156   :  { %v591_v59 = vpop.eup %590  ;;  %v460_v10 = vmul.f32 %v589_v8, %v448_v60 }
 0x157   :  { %v461_v9 = vmul.f32 %v591_v59, %v449_v12 }
 0x159   :  { %v485_v14 = vrot.slane %v461_v9, 4 }
 0x15b   :  { %v486_v11 = vsel %vm465_vm1, %v460_v10, %v485_v14 }
 0x15c   :  { %489 = vst [vmem:[#allocation2 + $0x8] sm:$0xff] %v486_v11 }
 0x15d   :  { %516 = dma.vmem_to_hbm [thread:$0]  %s509_s20, 256, %s511_s18, [#allocation3], %s638_s21, %s638_s21, %s639_s22  }
 0x1bd   :  { %v473_v22 = vpop.xlane.xlu0 %472 }
 0x1be   :  { %v474_v13 = vrot.slane %v473_v22, 4 }
 0x1c0   :  { %v475_v21 = vadd.f32 %v474_v13, %v473_v22 }
 0x1c2   :  { %v476_v16 = vrot.slane %v475_v21, 2 }
 0x1c4   :  { %v494_v56 = vpop.xlane.xlu1 %493  ;;  %v477_v19 = vadd.f32 %v476_v16, %v475_v21 }
 0x1c5   :  { %v495_v15 = vrot.slane %v494_v56, 4 }
 0x1c6   :  { %v478_v20 = vrot.slane %v477_v19, 1 }
 0x1c7   :  { %v496_v24 = vadd.f32 %v495_v15, %v494_v56 }
 0x1c8   :  { %v479_v25 = vadd.f32 %v478_v20, %v477_v19 }
 0x1c9   :  { %v497_v1 = vrot.slane %v496_v24, 2 }
 0x1ca   :  { %542 = vpush %v479_v25 }
 0x1cb   :  { %v498_v2 = vadd.f32 %v497_v1, %v496_v24 }
 0x1cd   :  { %v499_v3 = vrot.slane %v498_v2, 1 }
 0x1cf   :  { %v500_v4 = vadd.f32 %v499_v3, %v498_v2 }
 0x1d1   :  { %544 = vpush %v500_v4 }
 0x1fb   :  { %s543_s5 = spop %542 }
 0x1fc   :  { %482 = sst [smem:[#allocation5]] %s543_s5 }
 0x202   :  { %s545_s26 = spop %544 }
 0x203   :  { %503 = sst [smem:[#allocation5 + $0x1]] %s545_s26 }
 0x204   :  { %525 = dma.smem_to_hbm %s640_s27, 16, %s523_s25, [#allocation4]  }
 0x205   :  { %628 = dma.done.wait [#allocation3], 256  }
 0x206   :  { %629 = vsyncadd [#allocation3], 4294967040 }
 0x207   :  { %630 = dma.done.wait [#allocation4], 16  }
 0x208   :  { %631 = vsyncadd [#allocation4], 4294967280 }
 0x209   :  { %534 = sfence }
 0x20a   :  { %535 = vsyncpa [#allocation3], 1 }
 0x20b   :  { %536 = vsyncpa [#allocation4], 1 }

</bundles_post_ra>
